<compile_context>
chip_gen: v6e
topology: v6e:2x2x1
jax: 0.10.0
libtpu: 0.0.40
codegen_flags: <defaults>
</compile_context>

<pallas_src>
import functools

import jax
import jax.numpy as jnp
from jax.experimental import pallas as pl
from jax.experimental.pallas import tpu as pltpu


def _add_kernel(xd_ref, xt_ref, o_ref):
    o_ref[...] = xd_ref[...] + xt_ref[...]


def _mul_kernel(xd_ref, xt_ref, o_ref):
    o_ref[...] = xd_ref[...] * xt_ref[...]


def _concat_kernel(xd_ref, xt_ref, o_ref):
    f = xd_ref.shape[-1]
    # Static, lane-aligned slices -> unmasked aligned stores into the output.
    o_ref[:, 0:f] = xd_ref[...]
    o_ref[:, f:2 * f] = xt_ref[...]


def _choose_row_block(batch, target=512):
    """Largest row tile dividing `batch` (multiple of 8 when actually tiling)."""
    if batch <= target:
        return batch
    for rb in range(min(target, batch), 0, -1):
        if batch % rb == 0 and rb % 8 == 0:
            return rb
    return batch


@functools.partial(jax.jit, static_argnames=("how",))
def simple_joint(xd, xt, how):
    """Pallas implementation of Simple_Joint.forward(xd, xt)."""
    if xd.shape != xt.shape:
        raise ValueError("xd and xt must have the same shape")
    B, F = xd.shape

    if how == "concat":
        kernel, out_f = _concat_kernel, 2 * F
    elif how == "add":
        kernel, out_f = _add_kernel, F
    elif how == "multiple":
        kernel, out_f = _mul_kernel, F
    else:
        raise Exception(f"how {how} not supported")

    rb = _choose_row_block(B)
    grid = (B // rb,)

    return pl.pallas_call(
        kernel,
        out_shape=jax.ShapeDtypeStruct((B, out_f), xd.dtype),
        grid=grid,
        in_specs=[
            pl.BlockSpec((rb, F), lambda i: (i, 0)),   # xd tile
            pl.BlockSpec((rb, F), lambda i: (i, 0)),   # xt tile
        ],
        out_specs=pl.BlockSpec((rb, out_f), lambda i: (i, 0)),
        compiler_params=pltpu.CompilerParams(
            dimension_semantics=("parallel",)),
    )(xd, xt)


def simple_joint_reference(xd, xt, how):
    if how == "concat":
        return jnp.concatenate((xd, xt), axis=1)
    elif how == "add":
        return xd + xt
    elif how == "multiple":
        return xd * xt
    raise Exception(f"how {how} not supported")


if __name__ == "__main__":
    # Small but layout-friendly: 8 sublanes x 128 lanes per tile.
    B, F = 8, 128

    key = jax.random.PRNGKey(0)
    k_d, k_t = jax.random.split(key)
    xd = jax.random.normal(k_d, (B, F), jnp.float32)
    xt = jax.random.normal(k_t, (B, F), jnp.float32)

    for how in ("concat", "add", "multiple"):
        out = simple_joint(xd, xt, how)
        jax.block_until_ready(out)
        ref = simple_joint_reference(xd, xt, how)
        assert out.shape == ref.shape, (how, out.shape, ref.shape)
        assert jnp.allclose(out, ref, atol=1e-6, rtol=1e-6), (
            f"{how}: max abs err {jnp.max(jnp.abs(out - ref))}")

    print("KERNEL_OK")
</pallas_src>

<mosaic_0001>
module attributes {stable_mosaic.version = 11 : i64} {
  func.func @_concat_kernel(%arg0: i32, %arg1: memref<8x128xf32, #tpu.memory_space<vmem>>, %arg2: memref<8x128xf32, #tpu.memory_space<vmem>>, %arg3: memref<8x256xf32, #tpu.memory_space<vmem>>) attributes {dimension_semantics = [#tpu.dimension_semantics<parallel>], iteration_bounds = array<i64: 1>, scalar_prefetch = 0 : i64, scratch_operands = 0 : i64, tpu.core_type = #tpu.core_type<tc>, window_params = [{transform_indices = @transform_0, window_bounds = array<i64: 8, 128>}, {transform_indices = @transform_1, window_bounds = array<i64: 8, 128>}, {transform_indices = @transform_2, window_bounds = array<i64: 8, 256>}]} {
    %c0 = arith.constant 0 : index
    %c0_0 = arith.constant 0 : index
    %0 = vector.load %arg1[%c0, %c0_0] : memref<8x128xf32, #tpu.memory_space<vmem>>, vector<8x128xf32>
    %c0_1 = arith.constant 0 : index
    %c0_2 = arith.constant 0 : index
    %1 = vector.load %arg3[%c0_1, %c0_2] : memref<8x256xf32, #tpu.memory_space<vmem>>, vector<8x128xf32>
    tpu.vector_store %arg3[%c0_1, %c0_2], %0 {strides = array<i32>} : memref<8x256xf32, #tpu.memory_space<vmem>>, vector<8x128xf32>,
    %c0_3 = arith.constant 0 : index
    %c0_4 = arith.constant 0 : index
    %2 = vector.load %arg2[%c0_3, %c0_4] : memref<8x128xf32, #tpu.memory_space<vmem>>, vector<8x128xf32>
    %c0_5 = arith.constant 0 : index
    %c128 = arith.constant 128 : index
    %3 = vector.load %arg3[%c0_5, %c128] : memref<8x256xf32, #tpu.memory_space<vmem>>, vector<8x128xf32>
    tpu.vector_store %arg3[%c0_5, %c128], %2 {strides = array<i32>} : memref<8x256xf32, #tpu.memory_space<vmem>>, vector<8x128xf32>,
    return
  }
  func.func @transform_0(%arg0: i32) -> (i32, i32) {
    %c0_i32 = arith.constant 0 : i32
    %c0_i32_0 = arith.constant 0 : i32
    return %arg0, %c0_i32 : i32, i32
  }
  func.func @transform_1(%arg0: i32) -> (i32, i32) {
    %c0_i32 = arith.constant 0 : i32
    %c0_i32_0 = arith.constant 0 : i32
    return %arg0, %c0_i32 : i32, i32
  }
  func.func @transform_2(%arg0: i32) -> (i32, i32) {
    %c0_i32 = arith.constant 0 : i32
    %c0_i32_0 = arith.constant 0 : i32
    return %arg0, %c0_i32 : i32, i32
  }
}

</mosaic_0001>

<bundles_post_ra>
// kernel: simple_joint.1
= control target key start
LH: loop header
LB: loop body
LE: loop exit
PB: predicated region body
PF: predicated region fallthrough
CT: control target
= control target key end

     0   :  { %7 = vsyncpa [#allocation3], 0  ;;  %s152_s0 = inlined_call_operand.hbm [shape: f32[8,128], index: 0, kind: input, shape index: {}]   ;;  %s153_s1 = inlined_call_operand.hbm [shape: f32[8,128], index: 1, kind: input, shape index: {}]   ;;  %s154_s2 = inlined_call_operand.hbm [shape: f32[8,256], index: 2, kind: output, shape index: {}]  }
   0x1   :  { %8 = vsyncpa [#allocation6], 0 }
   0x2   :  { %9 = vsyncpa [#allocation4], 0  ;;  %s125_s9 = smov [#allocation2]   ;;  %s126_s11 = smov [#allocation5]  }
   0x3   :  { %s16_s10 = sshll.u32 %s125_s9, 4  ;;  %s26_s12 = sshll.u32 %s126_s11, 4  ;;  %s17_s10 = int_to_ptr.vmem [resolvable:$true] %s16_s10  ;;  %s27_s12 = int_to_ptr.vmem [resolvable:$true] %s26_s12 }
   0x4   :  { %s67_s13 = scalar_lea.vmem %s17_s10, 128  ;;  %p72_p1 = scmp.lt.s32.totalorder %s17_s10, %s17_s10 }
   0x5   :  { %p68_p0 = scmp.ne.s32.totalorder %s17_s10, %s67_s13  ;;  %p73_p2 = scmp.lt.s32.totalorder %s67_s13, %s67_s13 }
   0x7   :  { %p74_p3 = por %p73_p2, %p72_p1 }
   0x9   :  { %p75_p4 = pnand %p74_p3, %p68_p0 }
   0xb   :  { %78 = shalt.err (!%p75_p4)
}
   0xc   :  { %19 = dma.hbm_to_vmem [thread:$0]  %s152_s0, 128, %s17_s10, [#allocation3]  }
   0xd   :  { %s87_s16 = scalar_lea.vmem %s27_s12, 128  ;;  %p92_p6 = scmp.lt.s32.totalorder %s27_s12, %s27_s12 }
   0xe   :  { %p88_p5 = scmp.ne.s32.totalorder %s27_s12, %s87_s16  ;;  %p93_p7 = scmp.lt.s32.totalorder %s87_s16, %s87_s16 }
  0x10   :  { %p94_p8 = por %p93_p7, %p92_p6 }
  0x12   :  { %p95_p9 = pnand %p94_p8, %p88_p5 }
  0x14   :  { %98 = shalt.err (!%p95_p9)
}
  0x15   :  { %29 = dma.hbm_to_vmem [thread:$0]  %s153_s1, 128, %s27_s12, [#allocation6]  }
  0x16   :  { %119 = dma.done.wait [#allocation3], 128  }
  0x17   :  { %120 = vsyncadd [#allocation3], 4294967168 }
  0x18   :  { %121 = dma.done.wait [#allocation6], 128  }
  0x19   :  { %122 = vsyncadd [#allocation6], 4294967168  ;;  %s127_s19 = smov [#allocation7]   ;;  %v36_v0 = vld [vmem:[#allocation2] sm:$0xff]  ;;  %v38_v1 = vld [vmem:[#allocation5] sm:$0xff] }
  0x1a   :  { %s46_s20 = sshll.u32 %s127_s19, 4  ;;  %37 = vst [vmem:[#allocation7] sm:$0xff] %v36_v0  ;;  %39 = vst [vmem:[#allocation7 + $0x8] sm:$0xff] %v38_v1  ;;  %s47_s20 = int_to_ptr.vmem [resolvable:$true] %s46_s20 }
  0x1b   :  { %s99_s0 = scalar_lea.vmem %s47_s20, 256  ;;  %p104_p11 = scmp.lt.s32.totalorder %s47_s20, %s47_s20 }
  0x1c   :  { %p100_p10 = scmp.ne.s32.totalorder %s47_s20, %s99_s0  ;;  %p105_p12 = scmp.lt.s32.totalorder %s99_s0, %s99_s0 }
  0x1e   :  { %p106_p13 = por %p105_p12, %p104_p11 }
  0x20   :  { %p107_p0 = pnand %p106_p13, %p100_p10 }
  0x22   :  { %110 = shalt.err (!%p107_p0)
}
  0x23   :  { %49 = dma.vmem_to_hbm [thread:$0]  %s47_s20, 256, %s154_s2, [#allocation4]  }
  0x24   :  { %123 = dma.done.wait [#allocation4], 256  }
  0x25   :  { %124 = vsyncadd [#allocation4], 4294967040 }
  0x26   :  { %53 = vsyncpa [#allocation3], 1 }
  0x27   :  { %54 = vsyncpa [#allocation6], 1 }
  0x28   :  { %55 = vsyncpa [#allocation4], 1 }

</bundles_post_ra>
